<compile_context>
chip_gen: v7x
topology: tpu7x:2x2x1
jax: 0.10.0
libtpu: 0.0.40
codegen_flags: <defaults>
</compile_context>

<pallas_src>
import functools

import jax
import jax.numpy as jnp
from jax import lax
from jax.experimental import pallas as pl
from jax.experimental.pallas import tpu as pltpu

LANE = 128   # TPU lane width (last dim must be 128-dense for full vregs / unmasked vst)
SUB = 8      # sublane alignment


def _round_up(x, m):
    return ((x + m - 1) // m) * m


@functools.lru_cache(maxsize=None)
def _vmem_limit_bytes():
    """Generation-aware scoped-VMEM limit: ~75% of physical, capped for headroom."""
    try:
        cap = int(pltpu.get_tpu_info().vmem_capacity_bytes)
    except Exception:
        cap = 64 * 1024 * 1024  # conservative (v7x-sized) fallback
    return max(16 * 1024 * 1024, min(int(cap * 3 // 4), 112 * 1024 * 1024))


# ---------------- pass 1: per-edge messages ----------------------------------------------------
def _msg_kernel(hs_ref, ef_ref, wm1_ref, wm2_ref, bm_ref, msg_ref):
    f32 = jnp.float32
    # relu(concat([h_src, ef]) @ W_msg^T + b_msg) in split-weight form (avoids the concat).
    m = jnp.dot(hs_ref[...], wm1_ref[...], preferred_element_type=f32)
    m = m + jnp.dot(ef_ref[...], wm2_ref[...], preferred_element_type=f32)
    msg_ref[...] = jnp.maximum(m + bm_ref[...], 0.0).astype(msg_ref.dtype)


# ---------------- pass 2: scatter-sum over incoming edges + apply ------------------------------
def _agg_apply_kernel(first_tile_ref, num_tiles_ref, dst_ref, msg_ref, h_ref,
                      wa1_ref, wa2_ref, ba_ref, out_ref):
    f32 = jnp.float32
    i = pl.program_id(0)          # node tile
    j = pl.program_id(1)          # reduction step over this node tile's incident edge tiles
    tn = out_ref.shape[0]
    te = msg_ref.shape[0]

    @pl.when(j == 0)
    def _():
        out_ref[...] = jnp.zeros_like(out_ref)     # out_ref doubles as the h_neigh accumulator

    # Skip (node-tile, step) pairs beyond this node tile's edge range (dst-sorted edges =>
    # incident edges are contiguous; the index_map clamps so skipped steps also skip DMA).
    @pl.when(j < num_tiles_ref[i])
    def _():
        # Build the (TN, TE) scatter tile in-kernel from dst indices: exact 0/1 in msg dtype,
        # so the scatter-sum is a single native MXU matmul with f32 accumulation.
        node_ids = i * tn + lax.broadcasted_iota(jnp.int32, (tn, te), 0)
        adj = (node_ids == dst_ref[...]).astype(msg_ref.dtype)        # dst_ref is (1, TE)
        out_ref[...] += jnp.dot(adj, msg_ref[...], preferred_element_type=f32)

    @pl.when(j == pl.num_programs(1) - 1)
    def _():
        # apply: relu(concat([h, h_neigh]) @ W_apply^T + b_apply) in split-weight form.
        o = jnp.dot(h_ref[...], wa1_ref[...], preferred_element_type=f32)
        o = o + jnp.dot(out_ref[...], wa2_ref[...], preferred_element_type=f32)
        out_ref[...] = jnp.maximum(o + ba_ref[...], 0.0)


@functools.partial(jax.jit, static_argnames=("msg_dtype",))
def gnn_layer(nfeats, efeats, src, dst, W_msg, b_msg, W_apply, b_apply,
              *, msg_dtype=jnp.bfloat16):
    """Forward pass of GNNLayer: padding/layout + graph preprocessing + two Pallas kernels."""
    f32 = jnp.float32
    N, din = nfeats.shape
    E, ed = efeats.shape
    dout = W_msg.shape[0]

    # lane-dense feature dims
    din_p = _round_up(din, LANE)
    ed_p = _round_up(ed, LANE)
    dout_p = _round_up(dout, LANE)

    # tile sizes (sized so per-step VMEM stays small even on v7x's 64 MiB; clamp to tiny inputs)
    TE = min(1024, _round_up(E, LANE))   # edge tile: lane-dense contraction dim for pass 2
    E_pad = _round_up(E, TE)
    TN = min(256, _round_up(N, SUB))     # node tile
    N_pad = _round_up(N, TN)
    e_tiles = E_pad // TE
    n_tiles = N_pad // TN

    vmem_limit = _vmem_limit_bytes()

    # ---- graph preprocessing: O(E) XLA ops, no O(N*E) selectors --------------------------------
    # padded edges: src=0 (any valid row), dst=N_pad (matches no node id, sorts last).
    src_p = jnp.zeros((E_pad,), jnp.int32).at[:E].set(src.astype(jnp.int32))
    dst_p = jnp.full((E_pad,), N_pad, jnp.int32).at[:E].set(dst.astype(jnp.int32))
    ef_p = jnp.zeros((E_pad, ed_p), f32).at[:E, :ed].set(efeats.astype(f32))

    order = jnp.argsort(dst_p)                      # dst-sorted edges -> contiguous per-node ranges
    src_s, dst_s, ef_s = src_p[order], dst_p[order], ef_p[order]

    h_cols = jnp.zeros((N, din_p), f32).at[:, :din].set(nfeats.astype(f32))
    h_src = h_cols[src_s]                           # (E_pad, din_p) cheap row gather
    h_nodes = jnp.zeros((N_pad, din_p), f32).at[:N].set(h_cols)

    # per-node-tile edge-tile ranges (scalar prefetch -> SMEM)
    bounds = jnp.arange(n_tiles + 1, dtype=jnp.int32) * TN
    offs = jnp.searchsorted(dst_s, bounds).astype(jnp.int32)
    start, end = offs[:-1], offs[1:]
    first_tile = jnp.minimum(start // TE, e_tiles - 1).astype(jnp.int32)
    num_tiles = jnp.where(end > start, (end + TE - 1) // TE - start // TE, 0).astype(jnp.int32)

    dst_2d = dst_s.reshape(1, E_pad)                # streamed as (1, TE) int32 tiles

    # split + transpose weights at the concat boundary, zero-pad to lane-dense shapes.
    Wm_t = W_msg.astype(f32).T        # (din+ed,   dout)
    Wa_t = W_apply.astype(f32).T      # (din+dout, dout)
    wm1 = jnp.zeros((din_p, dout_p), f32).at[:din, :dout].set(Wm_t[:din])
    wm2 = jnp.zeros((ed_p, dout_p), f32).at[:ed, :dout].set(Wm_t[din:])
    wa1 = jnp.zeros((din_p, dout_p), f32).at[:din, :dout].set(Wa_t[:din])
    wa2 = jnp.zeros((dout_p, dout_p), f32).at[:dout, :dout].set(Wa_t[din:])
    bm = jnp.zeros((1, dout_p), f32).at[:, :dout].set(b_msg.astype(f32)[None, :])
    ba = jnp.zeros((1, dout_p), f32).at[:, :dout].set(b_apply.astype(f32)[None, :])

    resident = pl.Buffered(1)   # constant-index operands: DMA'd once, single-buffered

    # ---- pass 1: messages over edge tiles -------------------------------------------------------
    msg = pl.pallas_call(
        _msg_kernel,
        out_shape=jax.ShapeDtypeStruct((E_pad, dout_p), msg_dtype),
        grid_spec=pltpu.PrefetchScalarGridSpec(
            num_scalar_prefetch=0,
            grid=(e_tiles,),
            in_specs=[
                pl.BlockSpec((TE, din_p), lambda e: (e, 0)),        # gathered source features
                pl.BlockSpec((TE, ed_p), lambda e: (e, 0)),         # edge features
                pl.BlockSpec((din_p, dout_p), lambda e: (0, 0), pipeline_mode=resident),  # W_msg(node)
                pl.BlockSpec((ed_p, dout_p), lambda e: (0, 0), pipeline_mode=resident),   # W_msg(edge)
                pl.BlockSpec((1, dout_p), lambda e: (0, 0), pipeline_mode=resident),      # b_msg
            ],
            out_specs=pl.BlockSpec((TE, dout_p), lambda e: (e, 0)),
        ),
        compiler_params=pltpu.CompilerParams(
            dimension_semantics=("parallel",),
            vmem_limit_bytes=vmem_limit),
    )(h_src, ef_s, wm1, wm2, bm)

    # ---- pass 2: per-node-tile scatter-sum over incident edge tiles + apply --------------------
    def _etile(i, j, ft, nt):
        # edge-tile index for node tile i at reduction step j; clamped so skipped steps repeat
        # the previous block index (=> Pallas skips the DMA for them).
        return ft[i] + jnp.minimum(j, jnp.maximum(nt[i] - 1, 0))

    out = pl.pallas_call(
        _agg_apply_kernel,
        out_shape=jax.ShapeDtypeStruct((N_pad, dout_p), f32),
        grid_spec=pltpu.PrefetchScalarGridSpec(
            num_scalar_prefetch=2,                      # first_tile, num_tiles -> SMEM
            grid=(n_tiles, e_tiles),
            in_specs=[
                pl.BlockSpec((1, TE), lambda i, j, ft, nt: (0, _etile(i, j, ft, nt))),        # dst ids
                pl.BlockSpec((TE, dout_p), lambda i, j, ft, nt: (_etile(i, j, ft, nt), 0)),   # messages
                pl.BlockSpec((TN, din_p), lambda i, j, ft, nt: (i, 0)),                       # node feats
                pl.BlockSpec((din_p, dout_p), lambda i, j, ft, nt: (0, 0), pipeline_mode=resident),
                pl.BlockSpec((dout_p, dout_p), lambda i, j, ft, nt: (0, 0), pipeline_mode=resident),
                pl.BlockSpec((1, dout_p), lambda i, j, ft, nt: (0, 0), pipeline_mode=resident),
            ],
            out_specs=pl.BlockSpec((TN, dout_p), lambda i, j, ft, nt: (i, 0)),
        ),
        compiler_params=pltpu.CompilerParams(
            dimension_semantics=("parallel", "arbitrary"),
            vmem_limit_bytes=vmem_limit),
    )(first_tile, num_tiles, dst_2d, msg, h_nodes, wa1, wa2, ba)

    return out[:N, :dout]


def reference(h, src, dst, ef, W_msg, b_msg, W_apply, b_apply):
    """Pure-JAX reference matching the PyTorch forward semantics (float32)."""
    N = h.shape[0]
    cat = jnp.concatenate([h[src], ef], axis=1)
    msg = jax.nn.relu(cat @ W_msg.T + b_msg)
    h_neigh = jnp.zeros((N, msg.shape[1]), h.dtype).at[dst].add(msg)
    return jax.nn.relu(jnp.concatenate([h, h_neigh], axis=1) @ W_apply.T + b_apply)


if __name__ == "__main__":
    N, E = 8, 16                      # nodes, edges
    ndim_in, edims, ndim_out = 16, 8, 32

    key = jax.random.PRNGKey(0)
    k = jax.random.split(key, 8)

    nfeats = jax.random.normal(k[0], (N, ndim_in), jnp.float32)
    efeats = jax.random.normal(k[1], (E, edims), jnp.float32)
    src = jax.random.randint(k[2], (E,), 0, N)
    dst = jax.random.randint(k[3], (E,), 0, N)

    # Deterministic nn.Linear-style init: W (out, in), b (out,), U(-1/sqrt(fan_in), 1/sqrt(fan_in))
    def linear_init(kw, kb, fan_in, fan_out):
        bound = 1.0 / jnp.sqrt(jnp.float32(fan_in))
        W = jax.random.uniform(kw, (fan_out, fan_in), jnp.float32, -bound, bound)
        b = jax.random.uniform(kb, (fan_out,), jnp.float32, -bound, bound)
        return W, b

    W_msg, b_msg = linear_init(k[4], k[5], ndim_in + edims, ndim_out)
    W_apply, b_apply = linear_init(k[6], k[7], ndim_in + ndim_out, ndim_out)

    ref = reference(nfeats, src, dst, efeats, W_msg, b_msg, W_apply, b_apply)

    # default (bf16 inter-pass messages) — loose tolerance due to bf16 message rounding
    out = gnn_layer(nfeats, efeats, src, dst, W_msg, b_msg, W_apply, b_apply)
    out = jax.block_until_ready(out)
    assert out.shape == (N, ndim_out)
    assert jnp.allclose(out, ref, atol=2e-2, rtol=2e-2), "bf16-msg kernel mismatch vs reference"

    # f32 message path — tight validation of the kernel structure itself
    out_f32 = gnn_layer(nfeats, efeats, src, dst, W_msg, b_msg, W_apply, b_apply,
                        msg_dtype=jnp.float32)
    out_f32 = jax.block_until_ready(out_f32)
    assert jnp.allclose(out_f32, ref, atol=1e-4, rtol=1e-4), "f32-msg kernel mismatch vs reference"

    print("KERNEL_OK")
</pallas_src>

<mosaic_0001>
module attributes {stable_mosaic.version = 11 : i64} {
  func.func @_agg_apply_kernel(%arg0: i32, %arg1: i32, %arg2: memref<1xi32, #tpu.memory_space<smem>>, %arg3: memref<1xi32, #tpu.memory_space<smem>>, %arg4: memref<1x128xi32, #tpu.memory_space<vmem>>, %arg5: memref<128x128xbf16, #tpu.memory_space<vmem>>, %arg6: memref<8x128xf32, #tpu.memory_space<vmem>>, %arg7: memref<128x128xf32, #tpu.memory_space<vmem>>, %arg8: memref<128x128xf32, #tpu.memory_space<vmem>>, %arg9: memref<1x128xf32, #tpu.memory_space<vmem>>, %arg10: memref<8x128xf32, #tpu.memory_space<vmem>>) attributes {dimension_semantics = [#tpu.dimension_semantics<parallel>, #tpu.dimension_semantics<arbitrary>], iteration_bounds = array<i64: 1, 1>, scalar_prefetch = 2 : i64, scratch_operands = 0 : i64, tpu.core_type = #tpu.core_type<tc>, window_params = [{transform_indices = @transform_0, window_bounds = array<i64: 1, 128>}, {transform_indices = @transform_1, window_bounds = array<i64: 128, 128>}, {transform_indices = @transform_2, window_bounds = array<i64: 8, 128>}, {pipeline_mode = #tpu.pipeline_mode<synchronous>, transform_indices = @transform_3, window_bounds = array<i64: 128, 128>}, {pipeline_mode = #tpu.pipeline_mode<synchronous>, transform_indices = @transform_4, window_bounds = array<i64: 128, 128>}, {pipeline_mode = #tpu.pipeline_mode<synchronous>, transform_indices = @transform_5, window_bounds = array<i64: 1, 128>}, {transform_indices = @transform_6, window_bounds = array<i64: 8, 128>}]} {
    %c0_i32 = arith.constant 0 : i32
    %0 = arith.cmpi eq, %arg1, %c0_i32 : i32
    %1 = arith.extui %0 : i1 to i32
    %c0_i32_0 = arith.constant 0 : i32
    %2 = arith.cmpi ne, %1, %c0_i32_0 : i32
    scf.if %2 {
      %cst = arith.constant 0.000000e+00 : f32
      %11 = vector.broadcast %cst : f32 to vector<8x128xf32>
      %c0 = arith.constant 0 : index
      %c0_4 = arith.constant 0 : index
      %12 = vector.load %arg10[%c0, %c0_4] : memref<8x128xf32, #tpu.memory_space<vmem>>, vector<8x128xf32>
      tpu.vector_store %arg10[%c0, %c0_4], %11 {strides = array<i32>} : memref<8x128xf32, #tpu.memory_space<vmem>>, vector<8x128xf32>,
    } else {
    }
    %3 = arith.index_cast %arg0 : i32 to index
    %4 = memref.load %arg3[%3] : memref<1xi32, #tpu.memory_space<smem>>
    %5 = arith.cmpi slt, %arg1, %4 : i32
    %6 = arith.extui %5 : i1 to i32
    %c0_i32_1 = arith.constant 0 : i32
    %7 = arith.cmpi ne, %6, %c0_i32_1 : i32
    scf.if %7 {
      %c8_i32 = arith.constant 8 : i32
      %11 = arith.muli %arg0, %c8_i32 : i32
      %12 = tpu.iota {dimensions = array<i32: 0>} : vector<8x128xi32>
      %13 = vector.broadcast %11 : i32 to vector<8x128xi32>
      %14 = arith.addi %13, %12 : vector<8x128xi32>
      %c0 = arith.constant 0 : index
      %c0_4 = arith.constant 0 : index
      %15 = vector.load %arg4[%c0, %c0_4] : memref<1x128xi32, #tpu.memory_space<vmem>>, vector<1x128xi32>
      %16 = vector.broadcast %15 : vector<1x128xi32> to vector<8x128xi32>
      %17 = arith.cmpi eq, %14, %16 : vector<8x128xi32>
      %18 = arith.extui %17 : vector<8x128xi1> to vector<8x128xi32>
      %19 = arith.sitofp %18 : vector<8x128xi32> to vector<8x128xf32>
      %20 = arith.truncf %19 : vector<8x128xf32> to vector<8x128xbf16>
      %c0_5 = arith.constant 0 : index
      %c0_6 = arith.constant 0 : index
      %21 = vector.load %arg10[%c0_5, %c0_6] : memref<8x128xf32, #tpu.memory_space<vmem>>, vector<8x128xf32>
      %c0_7 = arith.constant 0 : index
      %c0_8 = arith.constant 0 : index
      %22 = vector.load %arg5[%c0_7, %c0_8] : memref<128x128xbf16, #tpu.memory_space<vmem>>, vector<128x128xbf16>
      %cst = arith.constant dense<0.000000e+00> : vector<8x128xf32>
      %23 = tpu.matmul %20, %22, %cst {dimension_numbers = #tpu.dot_dimension_numbers<[1], [0], [0], [1], [0, 0, 1, 1], [], []>} : vector<8x128xbf16>, vector<128x128xbf16>, vector<8x128xf32> -> vector<8x128xf32>
      %24 = arith.addf %21, %23 : vector<8x128xf32>
      %c0_9 = arith.constant 0 : index
      %c0_10 = arith.constant 0 : index
      %25 = vector.load %arg10[%c0_9, %c0_10] : memref<8x128xf32, #tpu.memory_space<vmem>>, vector<8x128xf32>
      tpu.vector_store %arg10[%c0_9, %c0_10], %24 {strides = array<i32>} : memref<8x128xf32, #tpu.memory_space<vmem>>, vector<8x128xf32>,
    } else {
    }
    %c0_i32_2 = arith.constant 0 : i32
    %8 = arith.cmpi eq, %arg1, %c0_i32_2 : i32
    %9 = arith.extui %8 : i1 to i32
    %c0_i32_3 = arith.constant 0 : i32
    %10 = arith.cmpi ne, %9, %c0_i32_3 : i32
    scf.if %10 {
      %c0 = arith.constant 0 : index
      %c0_4 = arith.constant 0 : index
      %11 = vector.load %arg6[%c0, %c0_4] : memref<8x128xf32, #tpu.memory_space<vmem>>, vector<8x128xf32>
      %c0_5 = arith.constant 0 : index
      %c0_6 = arith.constant 0 : index
      %12 = vector.load %arg7[%c0_5, %c0_6] : memref<128x128xf32, #tpu.memory_space<vmem>>, vector<128x128xf32>
      %cst = arith.constant dense<0.000000e+00> : vector<8x128xf32>
      %13 = tpu.matmul %11, %12, %cst {dimension_numbers = #tpu.dot_dimension_numbers<[1], [0], [0], [1], [0, 0, 1, 1], [], []>} : vector<8x128xf32>, vector<128x128xf32>, vector<8x128xf32> -> vector<8x128xf32>
      %c0_7 = arith.constant 0 : index
      %c0_8 = arith.constant 0 : index
      %14 = vector.load %arg10[%c0_7, %c0_8] : memref<8x128xf32, #tpu.memory_space<vmem>>, vector<8x128xf32>
      %c0_9 = arith.constant 0 : index
      %c0_10 = arith.constant 0 : index
      %15 = vector.load %arg8[%c0_9, %c0_10] : memref<128x128xf32, #tpu.memory_space<vmem>>, vector<128x128xf32>
      %cst_11 = arith.constant dense<0.000000e+00> : vector<8x128xf32>
      %16 = tpu.matmul %14, %15, %cst_11 {dimension_numbers = #tpu.dot_dimension_numbers<[1], [0], [0], [1], [0, 0, 1, 1], [], []>} : vector<8x128xf32>, vector<128x128xf32>, vector<8x128xf32> -> vector<8x128xf32>
      %17 = arith.addf %13, %16 : vector<8x128xf32>
      %c0_12 = arith.constant 0 : index
      %c0_13 = arith.constant 0 : index
      %18 = vector.load %arg9[%c0_12, %c0_13] : memref<1x128xf32, #tpu.memory_space<vmem>>, vector<1x128xf32>
      %19 = vector.broadcast %18 : vector<1x128xf32> to vector<8x128xf32>
      %20 = arith.addf %17, %19 : vector<8x128xf32>
      %cst_14 = arith.constant 0.000000e+00 : f32
      %21 = vector.broadcast %cst_14 : f32 to vector<8x128xf32>
      %22 = arith.maximumf %20, %21 : vector<8x128xf32>
      %c0_15 = arith.constant 0 : index
      %c0_16 = arith.constant 0 : index
      %23 = vector.load %arg10[%c0_15, %c0_16] : memref<8x128xf32, #tpu.memory_space<vmem>>, vector<8x128xf32>
      tpu.vector_store %arg10[%c0_15, %c0_16], %22 {strides = array<i32>} : memref<8x128xf32, #tpu.memory_space<vmem>>, vector<8x128xf32>,
    } else {
    }
    return
  }
  func.func @transform_0(%arg0: i32, %arg1: i32, %arg2: memref<1xi32, #tpu.memory_space<smem>>, %arg3: memref<1xi32, #tpu.memory_space<smem>>) -> (i32, i32) {
    %0 = arith.index_cast %arg0 : i32 to index
    %1 = memref.load %arg2[%0] : memref<1xi32, #tpu.memory_space<smem>>
    %2 = arith.index_cast %arg0 : i32 to index
    %3 = memref.load %arg3[%2] : memref<1xi32, #tpu.memory_space<smem>>
    %c1_i32 = arith.constant 1 : i32
    %4 = arith.subi %3, %c1_i32 : i32
    %c0_i32 = arith.constant 0 : i32
    %5 = arith.maxsi %4, %c0_i32 : i32
    %6 = arith.minsi %arg1, %5 : i32
    %7 = arith.addi %1, %6 : i32
    %c0_i32_0 = arith.constant 0 : i32
    %c0_i32_1 = arith.constant 0 : i32
    return %c0_i32_0, %7 : i32, i32
  }
  func.func @transform_1(%arg0: i32, %arg1: i32, %arg2: memref<1xi32, #tpu.memory_space<smem>>, %arg3: memref<1xi32, #tpu.memory_space<smem>>) -> (i32, i32) {
    %0 = arith.index_cast %arg0 : i32 to index
    %1 = memref.load %arg2[%0] : memref<1xi32, #tpu.memory_space<smem>>
    %2 = arith.index_cast %arg0 : i32 to index
    %3 = memref.load %arg3[%2] : memref<1xi32, #tpu.memory_space<smem>>
    %c1_i32 = arith.constant 1 : i32
    %4 = arith.subi %3, %c1_i32 : i32
    %c0_i32 = arith.constant 0 : i32
    %5 = arith.maxsi %4, %c0_i32 : i32
    %6 = arith.minsi %arg1, %5 : i32
    %7 = arith.addi %1, %6 : i32
    %c0_i32_0 = arith.constant 0 : i32
    %c0_i32_1 = arith.constant 0 : i32
    return %7, %c0_i32_0 : i32, i32
  }
  func.func @transform_2(%arg0: i32, %arg1: i32, %arg2: memref<1xi32, #tpu.memory_space<smem>>, %arg3: memref<1xi32, #tpu.memory_space<smem>>) -> (i32, i32) {
    %c0_i32 = arith.constant 0 : i32
    %c0_i32_0 = arith.constant 0 : i32
    return %arg0, %c0_i32 : i32, i32
  }
  func.func @transform_3(%arg0: i32, %arg1: i32, %arg2: memref<1xi32, #tpu.memory_space<smem>>, %arg3: memref<1xi32, #tpu.memory_space<smem>>) -> (i32, i32) {
    %c0_i32 = arith.constant 0 : i32
    %c0_i32_0 = arith.constant 0 : i32
    %c0_i32_1 = arith.constant 0 : i32
    return %c0_i32, %c0_i32_0 : i32, i32
  }
  func.func @transform_4(%arg0: i32, %arg1: i32, %arg2: memref<1xi32, #tpu.memory_space<smem>>, %arg3: memref<1xi32, #tpu.memory_space<smem>>) -> (i32, i32) {
    %c0_i32 = arith.constant 0 : i32
    %c0_i32_0 = arith.constant 0 : i32
    %c0_i32_1 = arith.constant 0 : i32
    return %c0_i32, %c0_i32_0 : i32, i32
  }
  func.func @transform_5(%arg0: i32, %arg1: i32, %arg2: memref<1xi32, #tpu.memory_space<smem>>, %arg3: memref<1xi32, #tpu.memory_space<smem>>) -> (i32, i32) {
    %c0_i32 = arith.constant 0 : i32
    %c0_i32_0 = arith.constant 0 : i32
    %c0_i32_1 = arith.constant 0 : i32
    return %c0_i32, %c0_i32_0 : i32, i32
  }
  func.func @transform_6(%arg0: i32, %arg1: i32, %arg2: memref<1xi32, #tpu.memory_space<smem>>, %arg3: memref<1xi32, #tpu.memory_space<smem>>) -> (i32, i32) {
    %c0_i32 = arith.constant 0 : i32
    %c0_i32_0 = arith.constant 0 : i32
    return %arg0, %c0_i32 : i32, i32
  }
}

module attributes {stable_mosaic.version = 11 : i64} {
  func.func @_msg_kernel(%arg0: i32, %arg1: memref<128x128xf32, #tpu.memory_space<vmem>>, %arg2: memref<128x128xf32, #tpu.memory_space<vmem>>, %arg3: memref<128x128xf32, #tpu.memory_space<vmem>>, %arg4: memref<128x128xf32, #tpu.memory_space<vmem>>, %arg5: memref<1x128xf32, #tpu.memory_space<vmem>>, %arg6: memref<128x128xbf16, #tpu.memory_space<vmem>>) attributes {dimension_semantics = [#tpu.dimension_semantics<parallel>], iteration_bounds = array<i64: 1>, scalar_prefetch = 0 : i64, scratch_operands = 0 : i64, tpu.core_type = #tpu.core_type<tc>, window_params = [{transform_indices = @transform_0, window_bounds = array<i64: 128, 128>}, {transform_indices = @transform_1, window_bounds = array<i64: 128, 128>}, {pipeline_mode = #tpu.pipeline_mode<synchronous>, transform_indices = @transform_2, window_bounds = array<i64: 128, 128>}, {pipeline_mode = #tpu.pipeline_mode<synchronous>, transform_indices = @transform_3, window_bounds = array<i64: 128, 128>}, {pipeline_mode = #tpu.pipeline_mode<synchronous>, transform_indices = @transform_4, window_bounds = array<i64: 1, 128>}, {transform_indices = @transform_5, window_bounds = array<i64: 128, 128>}]} {
    %c0 = arith.constant 0 : index
    %c0_0 = arith.constant 0 : index
    %0 = vector.load %arg1[%c0, %c0_0] : memref<128x128xf32, #tpu.memory_space<vmem>>, vector<128x128xf32>
    %c0_1 = arith.constant 0 : index
    %c0_2 = arith.constant 0 : index
    %1 = vector.load %arg3[%c0_1, %c0_2] : memref<128x128xf32, #tpu.memory_space<vmem>>, vector<128x128xf32>
    %cst = arith.constant dense<0.000000e+00> : vector<128x128xf32>
    %2 = tpu.matmul %0, %1, %cst {dimension_numbers = #tpu.dot_dimension_numbers<[1], [0], [0], [1], [0, 0, 1, 1], [], []>} : vector<128x128xf32>, vector<128x128xf32>, vector<128x128xf32> -> vector<128x128xf32>
    %c0_3 = arith.constant 0 : index
    %c0_4 = arith.constant 0 : index
    %3 = vector.load %arg2[%c0_3, %c0_4] : memref<128x128xf32, #tpu.memory_space<vmem>>, vector<128x128xf32>
    %c0_5 = arith.constant 0 : index
    %c0_6 = arith.constant 0 : index
    %4 = vector.load %arg4[%c0_5, %c0_6] : memref<128x128xf32, #tpu.memory_space<vmem>>, vector<128x128xf32>
    %cst_7 = arith.constant dense<0.000000e+00> : vector<128x128xf32>
    %5 = tpu.matmul %3, %4, %cst_7 {dimension_numbers = #tpu.dot_dimension_numbers<[1], [0], [0], [1], [0, 0, 1, 1], [], []>} : vector<128x128xf32>, vector<128x128xf32>, vector<128x128xf32> -> vector<128x128xf32>
    %6 = arith.addf %2, %5 : vector<128x128xf32>
    %c0_8 = arith.constant 0 : index
    %c0_9 = arith.constant 0 : index
    %7 = vector.load %arg5[%c0_8, %c0_9] : memref<1x128xf32, #tpu.memory_space<vmem>>, vector<1x128xf32>
    %8 = vector.broadcast %7 : vector<1x128xf32> to vector<128x128xf32>
    %9 = arith.addf %6, %8 : vector<128x128xf32>
    %cst_10 = arith.constant 0.000000e+00 : f32
    %10 = vector.broadcast %cst_10 : f32 to vector<128x128xf32>
    %11 = arith.maximumf %9, %10 : vector<128x128xf32>
    %12 = arith.truncf %11 : vector<128x128xf32> to vector<128x128xbf16>
    %c0_11 = arith.constant 0 : index
    %c0_12 = arith.constant 0 : index
    %13 = vector.load %arg6[%c0_11, %c0_12] : memref<128x128xbf16, #tpu.memory_space<vmem>>, vector<128x128xbf16>
    tpu.vector_store %arg6[%c0_11, %c0_12], %12 {strides = array<i32>} : memref<128x128xbf16, #tpu.memory_space<vmem>>, vector<128x128xbf16>,
    return
  }
  func.func @transform_0(%arg0: i32) -> (i32, i32) {
    %c0_i32 = arith.constant 0 : i32
    %c0_i32_0 = arith.constant 0 : i32
    return %arg0, %c0_i32 : i32, i32
  }
  func.func @transform_1(%arg0: i32) -> (i32, i32) {
    %c0_i32 = arith.constant 0 : i32
    %c0_i32_0 = arith.constant 0 : i32
    return %arg0, %c0_i32 : i32, i32
  }
  func.func @transform_2(%arg0: i32) -> (i32, i32) {
    %c0_i32 = arith.constant 0 : i32
    %c0_i32_0 = arith.constant 0 : i32
    %c0_i32_1 = arith.constant 0 : i32
    return %c0_i32, %c0_i32_0 : i32, i32
  }
  func.func @transform_3(%arg0: i32) -> (i32, i32) {
    %c0_i32 = arith.constant 0 : i32
    %c0_i32_0 = arith.constant 0 : i32
    %c0_i32_1 = arith.constant 0 : i32
    return %c0_i32, %c0_i32_0 : i32, i32
  }
  func.func @transform_4(%arg0: i32) -> (i32, i32) {
    %c0_i32 = arith.constant 0 : i32
    %c0_i32_0 = arith.constant 0 : i32
    %c0_i32_1 = arith.constant 0 : i32
    return %c0_i32, %c0_i32_0 : i32, i32
  }
  func.func @transform_5(%arg0: i32) -> (i32, i32) {
    %c0_i32 = arith.constant 0 : i32
    %c0_i32_0 = arith.constant 0 : i32
    return %arg0, %c0_i32 : i32, i32
  }
}

</mosaic_0001>

<bundles_post_ra>
// kernel: custom-call
= control target key start
LH: loop header
LB: loop body
LE: loop exit
PB: predicated region body
PF: predicated region fallthrough
CT: control target
= control target key end

     0   :  { %s6_s0 = inlined_call_operand.vmem [shape: u32[2], index: 0, kind: output, shape index: {}]  }

// kernel: gnn_layer.3
= control target key start
LH: loop header
LB: loop body
LE: loop exit
PB: predicated region body
PF: predicated region fallthrough
CT: control target
= control target key end

     0   :  { %15 = vsyncpa [#allocation6], 0  ;;  %v723_v0 = vmov 0.0   ;;  %s926_s0 = inlined_call_operand.<no memory space> [shape: s32[1], index: 0, kind: input, shape index: {}]   ;;  %s927_s1 = inlined_call_operand.<no memory space> [shape: s32[1], index: 1, kind: input, shape index: {}]   ;;  %s928_s2 = inlined_call_operand.vmem [shape: s32[1,128], index: 2, kind: input, shape index: {}]   ;;  %s929_s3 = inlined_call_operand.vmem [shape: bf16[128,128], index: 3, kind: input, shape index: {}]   ;;  %s930_s4 = inlined_call_operand.vmem [shape: f32[8,128], index: 4, kind: input, shape index: {}]   ;;  %s931_s5 = inlined_call_operand.vmem [shape: f32[128,128], index: 5, kind: input, shape index: {}]   ;;  %s932_s6 = inlined_call_operand.vmem [shape: f32[128,128], index: 6, kind: input, shape index: {}]   ;;  %s933_s7 = inlined_call_operand.vmem [shape: f32[1,128], index: 7, kind: input, shape index: {}]   ;;  %s934_s8 = inlined_call_operand.hbm [shape: f32[8,128], index: 8, kind: output, shape index: {}]  }
   0x1   :  { %s476_s29 = sadd.s32 4294967295, %s927_s1  ;;  %139 = vst [vmem:[#allocation5] sm:$0xff] %v723_v0  ;;  %p483_p3 = scmp.le.s32.totalorder %s927_s1, 0 }
   0x2   :  { %p96_p0 = scmp.gt.s32.totalorder %s476_s29, 0  ;;  %v724_v2 = vmov (!%p483_p3), 0.0   ;;  %vm725_vm0 = vmmov (!%p483_p3), 0   ;;  %v146_v8 = vlaneseq (!%p483_p3)  ;;  %v726_v13 = vmov (!%p483_p3), 1.0|1.0  }
   0x3   :  { %546 = vmatprep.subr.bf16.mxu0 (!%p483_p3), %v724_v2  ;;  %562 = vmatprep.mubr.msk.bf16.mxu0 (!%p483_p3), %vm725_vm0, %v724_v2 }
   0x4   :  { %s936_s29 = smov (!%p96_p0, %s476_s29), 0  ;;  %v147_v10 = vshrl.u32 (!%p483_p3), %v146_v8, 7 }
   0x5   :  { %s938_s29 = smov (%p96_p0, %s936_s29), 0 }
   0x6   :  { %s100_s10 = sadd.s32 %s938_s29, %s926_s0  ;;  %144 = sbr.rel (%p483_p3) target bundleno = 260 (0x104), region = 33 }
   0x7   :  { %p101_p1 = scmp.lt.s32.totalorder %s100_s10, 0  ;;  %s480_s11 = sshll.u32 %s100_s10, 4 }
   0x8   :  { %p121_p2 = scmp.lt.s32.totalorder %s480_s11, 15  ;;  %v159_v14 = vld [vmem:[#allocation5] sm:$0xff] (!%p483_p3) }
   0x9   :  { %s940_s10 = smov (!%p101_p1, %s100_s10), 0 }
   0xa   :  { %s942_s11 = smov (!%p121_p2, %s480_s11), 15  ;;  %s103_s14 = scalar_lea.vmem %s928_s2, %s940_s10 }
   0xb   :  { %s481_s15 = sshll.u32 %s942_s11, 2  ;;  %v484_v11 = vld [vmem:[%s103_s14] ss:$0 sm:$0xff] (!%p483_p3) }
   0xc   :  { %s124_s18 = scalar_lea.vmem %s929_s3, %s481_s15  ;;  %vm155_vm1 = vcmp.eq.s32.totalorder (!%p483_p3), %v147_v10, %v484_v11 }
   0xd   :  { %v691_v1 = vld [vmem:[%s124_s18] sm:$0xff]   ;;  %v692_v3 = vld [vmem:[%s124_s18 + $0x8] sm:$0xff]   ;;  %v693_v4 = vld [vmem:[%s124_s18 + $0x10] sm:$0xff]  }
   0xe   :  { %547 = vmatpush3.bf16.msra.mxu0 %v691_v1  ;;  %v694_v5 = vld [vmem:[%s124_s18 + $0x18] sm:$0xff]   ;;  %v695_v6 = vld [vmem:[%s124_s18 + $0x20] sm:$0xff]   ;;  %v696_v7 = vld [vmem:[%s124_s18 + $0x28] sm:$0xff]  }
   0xf   :  { %548 = vmatprep.subr.bf16.mxu0 %v724_v2  ;;  %v697_v9 = vld [vmem:[%s124_s18 + $0x30] sm:$0xff]   ;;  %v698_v12 = vld [vmem:[%s124_s18 + $0x38] sm:$0xff]   ;;  %vm494_vm2 = vmpackc.low %vm155_vm1, %vm155_vm1 }
  0x12   :  { %549 = vmatpush3.bf16.msra.mxu0 %v692_v3 }
  0x13   :  { %550 = vmatprep.subr.bf16.mxu0 %v724_v2 }
  0x16   :  { %551 = vmatpush3.bf16.msra.mxu0 %v693_v4 }
  0x17   :  { %552 = vmatprep.subr.bf16.mxu0 %v724_v2 }
  0x1a   :  { %553 = vmatpush3.bf16.msra.mxu0 %v694_v5 }
  0x1b   :  { %554 = vmatprep.subr.bf16.mxu0 %v724_v2 }
  0x1e   :  { %555 = vmatpush3.bf16.msra.mxu0 %v695_v6 }
  0x1f   :  { %556 = vmatprep.subr.bf16.mxu0 %v724_v2 }
  0x22   :  { %557 = vmatpush3.bf16.msra.mxu0 %v696_v7 }
  0x23   :  { %558 = vmatprep.subr.bf16.mxu0 %v724_v2 }
  0x26   :  { %559 = vmatpush3.bf16.msra.mxu0 %v697_v9 }
  0x27   :  { %560 = vmatprep.subr.bf16.mxu0 %v724_v2 }
  0x2a   :  { %561 = vmatpush3.bf16.msra.mxu0 %v698_v12 }
  0x2d   :  { %563 = vmatmul.mubr.msk.bf16.vlgmr.msra.gmra.mrb[0].mxu0 %vm494_vm2, %v726_v13 }
 0x100   :  { %v258_v15 = vpop.f32.mrb[0].mxu0 }
 0x101   :  { %v264_v16 = vadd.f32 %v258_v15, %v159_v14  ;;  %v564_v17 = vpop.f32.mrb[1].mxu0 }
 0x102   :  { %v261_v18 = vpop.f32.mrb[2].mxu0 }
 0x103   :  { %265 = vst [vmem:[#allocation5] sm:$0xff] %v264_v16  ;;  %v565_v19 = vpop.f32.mrb[3].mxu0 }
 0x104 PF:  { %v287_v20 = vld [vmem:[%s932_s6] sm:$0xff]  ;;  %v288_v21 = vld [vmem:[%s932_s6 + $0x8] sm:$0xff]  ;;  %v727_v23 = vmov 0.0|0.0   ;;  %v289_v26 = vld [vmem:[%s932_s6 + $0x10] sm:$0xff]  ;;  %vm728_vm3 = vmmov 0   ;;  %s729_s9 = smov [#allocation5]  }
 0x105   :  { %v270_v22 = vld [vmem:[%s931_s5] sm:$0xff]  ;;  %636 = vmatprep.subr.bf16.mxu0 %v727_v23  ;;  %660 = vmatprep.subr.bf16.mxu1 %v727_v23  ;;  %v637_v24 = vpack.c.bf16 %v288_v21, %v287_v20  ;;  %v271_v25 = vld [vmem:[%s931_s5 + $0x8] sm:$0xff]  ;;  %v290_v27 = vld [vmem:[%s932_s6 + $0x18] sm:$0xff]  ;;  %s459_s10 = sshll.u32 %s729_s9, 4  ;;  %s460_s10 = int_to_ptr.vmem [resolvable:$true] %s459_s10 }
 0x106   :  { %v661_v28 = vpack.c.bf16 %v271_v25, %v270_v22  ;;  %v272_v29 = vld [vmem:[%s931_s5 + $0x10] sm:$0xff]  ;;  %v273_v30 = vld [vmem:[%s931_s5 + $0x18] sm:$0xff]  ;;  %598 = vmatprep.mubr.msk.f32.mxu0 %vm728_vm3, %v723_v0  ;;  %633 = vmatprep.mubr.msk.f32.mxu1 %vm728_vm3, %v723_v0  ;;  %v640_v31 = vpack.c.bf16 %v290_v27, %v289_v26  ;;  %v291_v33 = vld [vmem:[%s932_s6 + $0x20] sm:$0xff]  ;;  %s699_s11 = scalar_lea.vmem %s460_s10, 128  ;;  %p704_p5 = scmp.lt.s32.totalorder %s460_s10, %s460_s10 }
 0x107   :  { %638 = vmatpush3.bf16.msra.mxu0 %v637_v24  ;;  %v664_v32 = vpack.c.bf16 %v273_v30, %v272_v29  ;;  %v292_v34 = vld [vmem:[%s932_s6 + $0x28] sm:$0xff]  ;;  %v274_v35 = vld [vmem:[%s931_s5 + $0x20] sm:$0xff]  ;;  %v293_v39 = vld [vmem:[%s932_s6 + $0x30] sm:$0xff]  ;;  %p700_p4 = scmp.ne.s32.totalorder %s460_s10, %s699_s11  ;;  %p705_p6 = scmp.lt.s32.totalorder %s699_s11, %s699_s11 }
 0x108   :  { %662 = vmatpush3.bf16.msra.mxu1 %v661_v28  ;;  %639 = vmatprep.subr.bf16.mxu0 %v727_v23  ;;  %v275_v36 = vld [vmem:[%s931_s5 + $0x28] sm:$0xff]  ;;  %v643_v37 = vpack.c.bf16 %v292_v34, %v291_v33  ;;  %v294_v40 = vld [vmem:[%s932_s6 + $0x38] sm:$0xff]  ;;  %v276_v41 = vld [vmem:[%s931_s5 + $0x30] sm:$0xff] }
 0x109   :  { %663 = vmatprep.subr.bf16.mxu1 %v727_v23  ;;  %v667_v38 = vpack.c.bf16 %v275_v36, %v274_v35  ;;  %v277_v42 = vld [vmem:[%s931_s5 + $0x38] sm:$0xff]  ;;  %v646_v43 = vpack.c.bf16 %v294_v40, %v293_v39  ;;  %v295_v45 = vld [vmem:[%s932_s6 + $0x40] sm:$0xff]  ;;  %v296_v46 = vld [vmem:[%s932_s6 + $0x48] sm:$0xff]  ;;  %p706_p7 = por %p705_p6, %p704_p5 }
 0x10a   :  { %v670_v44 = vpack.c.bf16 %v277_v42, %v276_v41  ;;  %v278_v47 = vld [vmem:[%s931_s5 + $0x40] sm:$0xff]  ;;  %v279_v48 = vld [vmem:[%s931_s5 + $0x48] sm:$0xff]  ;;  %v649_v49 = vpack.c.bf16 %v296_v46, %v295_v45  ;;  %v297_v51 = vld [vmem:[%s932_s6 + $0x50] sm:$0xff] }
 0x10b   :  { %641 = vmatpush3.bf16.msra.mxu0 %v640_v31  ;;  %v673_v50 = vpack.c.bf16 %v279_v48, %v278_v47  ;;  %v298_v52 = vld [vmem:[%s932_s6 + $0x58] sm:$0xff]  ;;  %v280_v53 = vld [vmem:[%s931_s5 + $0x50] sm:$0xff]  ;;  %v299_v57 = vld [vmem:[%s932_s6 + $0x60] sm:$0xff]  ;;  %p707_p8 = pnand %p706_p7, %p700_p4 }
 0x10c   :  { %665 = vmatpush3.bf16.msra.mxu1 %v664_v32  ;;  %642 = vmatprep.subr.bf16.mxu0 %v727_v23  ;;  %v281_v54 = vld [vmem:[%s931_s5 + $0x58] sm:$0xff]  ;;  %v652_v55 = vpack.c.bf16 %v298_v52, %v297_v51  ;;  %v300_v58 = vld [vmem:[%s932_s6 + $0x68] sm:$0xff]  ;;  %v282_v59 = vld [vmem:[%s931_s5 + $0x60] sm:$0xff] }
 0x10d   :  { %666 = vmatprep.subr.bf16.mxu1 %v727_v23  ;;  %v676_v56 = vpack.c.bf16 %v281_v54, %v280_v53  ;;  %v283_v60 = vld [vmem:[%s931_s5 + $0x68] sm:$0xff]  ;;  %v655_v61 = vpack.c.bf16 %v300_v58, %v299_v57  ;;  %v301_v63 = vld [vmem:[%s932_s6 + $0x70] sm:$0xff]  ;;  %v302_v0 = vld [vmem:[%s932_s6 + $0x78] sm:$0xff] }
 0x10e   :  { %v679_v62 = vpack.c.bf16 %v283_v60, %v282_v59  ;;  %v284_v1 = vld [vmem:[%s931_s5 + $0x70] sm:$0xff]  ;;  %v285_v2 = vld [vmem:[%s931_s5 + $0x78] sm:$0xff]  ;;  %v658_v3 = vpack.c.bf16 %v302_v0, %v301_v63  ;;  %v286_v5 = vld [vmem:[#allocation5] sm:$0xff] }
 0x10f   :  { %644 = vmatpush3.bf16.msra.mxu0 %v643_v37  ;;  %v682_v4 = vpack.c.bf16 %v285_v2, %v284_v1  ;;  %v269_v6 = vld [vmem:[%s930_s4] sm:$0xff] }
 0x110   :  { %668 = vmatpush3.bf16.msra.mxu1 %v667_v38  ;;  %645 = vmatprep.subr.bf16.mxu0 %v727_v23  ;;  %v496_v9 = vld [vmem:[%s933_s7] ss:$0 sm:$0xff] }
 0x111   :  { %669 = vmatprep.subr.bf16.mxu1 %v727_v23 }
 0x113   :  { %647 = vmatpush3.bf16.msra.mxu0 %v646_v43 }
 0x114   :  { %671 = vmatpush3.bf16.msra.mxu1 %v670_v44  ;;  %648 = vmatprep.subr.bf16.mxu0 %v727_v23 }
 0x115   :  { %672 = vmatprep.subr.bf16.mxu1 %v727_v23 }
 0x117   :  { %650 = vmatpush3.bf16.msra.mxu0 %v649_v49 }
 0x118   :  { %674 = vmatpush3.bf16.msra.mxu1 %v673_v50  ;;  %651 = vmatprep.subr.bf16.mxu0 %v727_v23 }
 0x119   :  { %675 = vmatprep.subr.bf16.mxu1 %v727_v23 }
 0x11b   :  { %653 = vmatpush3.bf16.msra.mxu0 %v652_v55 }
 0x11c   :  { %677 = vmatpush3.bf16.msra.mxu1 %v676_v56  ;;  %654 = vmatprep.subr.bf16.mxu0 %v727_v23 }
 0x11d   :  { %678 = vmatprep.subr.bf16.mxu1 %v727_v23 }
 0x11f   :  { %656 = vmatpush3.bf16.msra.mxu0 %v655_v61 }
 0x120   :  { %680 = vmatpush3.bf16.msra.mxu1 %v679_v62  ;;  %657 = vmatprep.subr.bf16.mxu0 %v727_v23 }
 0x121   :  { %681 = vmatprep.subr.bf16.mxu1 %v727_v23 }
 0x123   :  { %659 = vmatpush3.bf16.msra.mxu0 %v658_v3 }
 0x124   :  { %683 = vmatpush3.bf16.msra.mxu1 %v682_v4 }
 0x126   :  { %599 = vmatmul.mubr.f32.vlgmr.msra.gmra.mrb[0].mxu0 %v286_v5 }
 0x127   :  { %634 = vmatmul.mubr.f32.vlgmr.msra.gmra.mrb[0].mxu1 %v269_v6 }
 0x1f9   :  { %v369_v7 = vpop.f32.mrb[0].mxu0 }
 0x1fa   :  { %v439_v8 = vpop.f32.mrb[0].mxu1  ;;  %v600_v10 = vpop.f32.mrb[1].mxu0 }
 0x1fb   :  { %v440_v11 = vadd.f32 %v439_v8, %v369_v7  ;;  %v635_v12 = vpop.f32.mrb[1].mxu1 }
 0x1fd   :  { %v450_v13 = vadd.f32 %v496_v9, %v440_v11 }
 0x1ff   :  { %v451_v14 = vmax.f32 %v450_v13, 0.0 }
 0x201   :  { %452 = vst [vmem:[#allocation5] sm:$0xff] %v451_v14 }
 0x202   :  { %710 = shalt.err (!%p707_p8)
}
 0x203   :  { %s711_s7 = scalar_lea.hbm %s934_s8, 128 }
 0x204   :  { %p712_p9 = scmp.ne.s32.totalorder %s934_s8, %s711_s7  ;;  %p715_p10 = scmp.lt.u32.totalorder %s711_s7, %s934_s8 }
 0x206   :  { %p717_p11 = pnand %p715_p10, %p712_p9 }
 0x208   :  { %720 = shalt.err (!%p717_p11)
}
 0x209   :  { %462 = dma.vmem_to_hbm [thread:$0]  %s460_s10, 128, %s934_s8, [#allocation6]  }
 0x20a   :  { %721 = dma.done.wait [#allocation6], 128  }
 0x20b   :  { %722 = vsyncadd [#allocation6], 4294967168 }
 0x20c   :  { %466 = vsyncpa [#allocation6], 1 }

// kernel: gnn_layer.2
= control target key start
LH: loop header
LB: loop body
LE: loop exit
PB: predicated region body
PF: predicated region fallthrough
CT: control target
= control target key end

     0   :  { %s1100_s3 = inlined_call_operand.vmem [shape: f32[128,128], index: 3, kind: input, shape index: {}]   ;;  %s1101_s2 = inlined_call_operand.vmem [shape: f32[128,128], index: 2, kind: input, shape index: {}]   ;;  %s1102_s1 = inlined_call_operand.vmem [shape: f32[128,128], index: 1, kind: input, shape index: {}]   ;;  %s1103_s0 = inlined_call_operand.vmem [shape: f32[128,128], index: 0, kind: input, shape index: {}]   ;;  %s1104_s4 = inlined_call_operand.vmem [shape: f32[1,128], index: 4, kind: input, shape index: {}]   ;;  %s1105_s5 = inlined_call_operand.vmem [shape: bf16[128,128], index: 5, kind: output, shape index: {}]  }
   0x1   :  { %v68_v0 = vld [vmem:[%s1100_s3] sm:$0xff]  ;;  %v69_v1 = vld [vmem:[%s1100_s3 + $0x8] sm:$0xff]  ;;  %v70_v5 = vld [vmem:[%s1100_s3 + $0x10] sm:$0xff] }
   0x2   :  { %v36_v2 = vld [vmem:[%s1101_s2] sm:$0xff]  ;;  %v753_v3 = vpack.c.bf16 %v69_v1, %v68_v0  ;;  %v37_v4 = vld [vmem:[%s1101_s2 + $0x8] sm:$0xff]  ;;  %v71_v6 = vld [vmem:[%s1100_s3 + $0x18] sm:$0xff] }
   0x3   :  { %v785_v7 = vpack.c.bf16 %v37_v4, %v36_v2  ;;  %v757_v8 = vpack.c.bf16 %v71_v6, %v70_v5  ;;  %v38_v9 = vld [vmem:[%s1101_s2 + $0x10] sm:$0xff]  ;;  %v39_v10 = vld [vmem:[%s1101_s2 + $0x18] sm:$0xff]  ;;  %v72_v11 = vld [vmem:[%s1100_s3 + $0x20] sm:$0xff] }
   0x4   :  { %754 = vmatprep.subr.bf16.mxu1 %v753_v3  ;;  %v789_v12 = vpack.c.bf16 %v39_v10, %v38_v9  ;;  %v73_v13 = vld [vmem:[%s1100_s3 + $0x28] sm:$0xff]  ;;  %v40_v14 = vld [vmem:[%s1101_s2 + $0x20] sm:$0xff]  ;;  %v74_v18 = vld [vmem:[%s1100_s3 + $0x30] sm:$0xff] }
   0x5   :  { %v41_v15 = vld [vmem:[%s1101_s2 + $0x28] sm:$0xff]  ;;  %786 = vmatprep.subr.bf16.mxu0 %v785_v7  ;;  %756 = vmatpush3.bf16.msra.mxu1 %v753_v3  ;;  %v761_v16 = vpack.c.bf16 %v73_v13, %v72_v11  ;;  %v75_v19 = vld [vmem:[%s1100_s3 + $0x38] sm:$0xff]  ;;  %v42_v20 = vld [vmem:[%s1101_s2 + $0x30] sm:$0xff] }
   0x6   :  { %788 = vmatpush3.bf16.msra.mxu0 %v785_v7  ;;  %758 = vmatprep.subr.bf16.mxu1 %v757_v8  ;;  %v793_v17 = vpack.c.bf16 %v41_v15, %v40_v14  ;;  %v43_v21 = vld [vmem:[%s1101_s2 + $0x38] sm:$0xff]  ;;  %v765_v22 = vpack.c.bf16 %v75_v19, %v74_v18  ;;  %v76_v24 = vld [vmem:[%s1100_s3 + $0x40] sm:$0xff]  ;;  %v77_v25 = vld [vmem:[%s1100_s3 + $0x48] sm:$0xff] }
   0x7   :  { %790 = vmatprep.subr.bf16.mxu0 %v789_v12  ;;  %v797_v23 = vpack.c.bf16 %v43_v21, %v42_v20  ;;  %v52_v26 = vld [vmem:[%s1102_s1] sm:$0xff]  ;;  %v45_v28 = vld [vmem:[%s1101_s2 + $0x48] sm:$0xff]  ;;  %v769_v30 = vpack.c.bf16 %v77_v25, %v76_v24  ;;  %v78_v32 = vld [vmem:[%s1100_s3 + $0x50] sm:$0xff] }
   0x8   :  { %v44_v27 = vld [vmem:[%s1101_s2 + $0x40] sm:$0xff]  ;;  %673 = vmatprep.mubr.f32.mxu1 %v52_v26  ;;  %v79_v33 = vld [vmem:[%s1100_s3 + $0x58] sm:$0xff]  ;;  %v46_v34 = vld [vmem:[%s1101_s2 + $0x50] sm:$0xff] }
   0x9   :  { %760 = vmatpush3.bf16.msra.mxu1 %v757_v8  ;;  %v20_v29 = vld [vmem:[%s1103_s0] sm:$0xff]  ;;  %v801_v31 = vpack.c.bf16 %v45_v28, %v44_v27  ;;  %v47_v35 = vld [vmem:[%s1101_s2 + $0x58] sm:$0xff]  ;;  %v773_v36 = vpack.c.bf16 %v79_v33, %v78_v32  ;;  %v81_v39 = vld [vmem:[%s1100_s3 + $0x68] sm:$0xff] }
   0xa   :  { %792 = vmatpush3.bf16.msra.mxu0 %v789_v12  ;;  %762 = vmatprep.subr.bf16.mxu1 %v761_v16  ;;  %v805_v37 = vpack.c.bf16 %v47_v35, %v46_v34  ;;  %v80_v38 = vld [vmem:[%s1100_s3 + $0x60] sm:$0xff]  ;;  %v49_v41 = vld [vmem:[%s1101_s2 + $0x68] sm:$0xff]  ;;  %v82_v44 = vld [vmem:[%s1100_s3 + $0x70] sm:$0xff] }
   0xb   :  { %794 = vmatprep.subr.bf16.mxu0 %v793_v17  ;;  %729 = vmatprep.mubr.f32.mxu0 %v20_v29  ;;  %v48_v40 = vld [vmem:[%s1101_s2 + $0x60] sm:$0xff]  ;;  %v777_v42 = vpack.c.bf16 %v81_v39, %v80_v38  ;;  %v83_v45 = vld [vmem:[%s1100_s3 + $0x78] sm:$0xff]  ;;  %v50_v46 = vld [vmem:[%s1101_s2 + $0x70] sm:$0xff] }
   0xc   :  { %v809_v43 = vpack.c.bf16 %v49_v41, %v48_v40  ;;  %v51_v47 = vld [vmem:[%s1101_s2 + $0x78] sm:$0xff]  ;;  %v781_v48 = vpack.c.bf16 %v83_v45, %v82_v44  ;;  %v53_v50 = vld [vmem:[%s1102_s1 + $0x8] sm:$0xff]  ;;  %v54_v52 = vld [vmem:[%s1102_s1 + $0x10] sm:$0xff] }
   0xd   :  { %764 = vmatpush3.bf16.msra.mxu1 %v761_v16  ;;  %v813_v49 = vpack.c.bf16 %v51_v47, %v50_v46  ;;  %v21_v51 = vld [vmem:[%s1103_s0 + $0x8] sm:$0xff]  ;;  %v22_v53 = vld [vmem:[%s1103_s0 + $0x10] sm:$0xff]  ;;  %v55_v54 = vld [vmem:[%s1102_s1 + $0x18] sm:$0xff] }
   0xe   :  { %796 = vmatpush3.bf16.msra.mxu0 %v793_v17  ;;  %766 = vmatprep.subr.bf16.mxu1 %v765_v22  ;;  %v23_v55 = vld [vmem:[%s1103_s0 + $0x18] sm:$0xff]  ;;  %v56_v56 = vld [vmem:[%s1102_s1 + $0x20] sm:$0xff]  ;;  %v57_v58 = vld [vmem:[%s1102_s1 + $0x28] sm:$0xff] }
   0xf   :  { %798 = vmatprep.subr.bf16.mxu0 %v797_v23  ;;  %v24_v57 = vld [vmem:[%s1103_s0 + $0x20] sm:$0xff]  ;;  %v25_v59 = vld [vmem:[%s1103_s0 + $0x28] sm:$0xff]  ;;  %v58_v60 = vld [vmem:[%s1102_s1 + $0x30] sm:$0xff] }
  0x10   :  { %v26_v61 = vld [vmem:[%s1103_s0 + $0x30] sm:$0xff]  ;;  %v59_v62 = vld [vmem:[%s1102_s1 + $0x38] sm:$0xff]  ;;  %v60_v0 = vld [vmem:[%s1102_s1 + $0x40] sm:$0xff] }
  0x11   :  { %768 = vmatpush3.bf16.msra.mxu1 %v765_v22  ;;  %v27_v63 = vld [vmem:[%s1103_s0 + $0x38] sm:$0xff]  ;;  %v28_v1 = vld [vmem:[%s1103_s0 + $0x40] sm:$0xff]  ;;  %v61_v2 = vld [vmem:[%s1102_s1 + $0x48] sm:$0xff] }
  0x12   :  { %800 = vmatpush3.bf16.msra.mxu0 %v797_v23  ;;  %770 = vmatprep.subr.bf16.mxu1 %v769_v30  ;;  %v29_v3 = vld [vmem:[%s1103_s0 + $0x48] sm:$0xff]  ;;  %v62_v4 = vld [vmem:[%s1102_s1 + $0x50] sm:$0xff]  ;;  %v63_v6 = vld [vmem:[%s1102_s1 + $0x58] sm:$0xff] }
  0x13   :  { %802 = vmatprep.subr.bf16.mxu0 %v801_v31  ;;  %v30_v5 = vld [vmem:[%s1103_s0 + $0x50] sm:$0xff]  ;;  %v31_v7 = vld [vmem:[%s1103_s0 + $0x58] sm:$0xff]  ;;  %v64_v8 = vld [vmem:[%s1102_s1 + $0x60] sm:$0xff] }
  0x14   :  { %v32_v9 = vld [vmem:[%s1103_s0 + $0x60] sm:$0xff]  ;;  %v65_v10 = vld [vmem:[%s1102_s1 + $0x68] sm:$0xff]  ;;  %v66_v12 = vld [vmem:[%s1102_s1 + $0x70] sm:$0xff] }
  0x15   :  { %772 = vmatpush3.bf16.msra.mxu1 %v769_v30  ;;  %v33_v11 = vld [vmem:[%s1103_s0 + $0x68] sm:$0xff]  ;;  %v34_v13 = vld [vmem:[%s1103_s0 + $0x70] sm:$0xff]  ;;  %v67_v14 = vld [vmem:[%s1102_s1 + $0x78] sm:$0xff] }
  0x16   :  { %804 = vmatpush3.bf16.msra.mxu0 %v801_v31  ;;  %774 = vmatprep.subr.bf16.mxu1 %v773_v36  ;;  %v35_v15 = vld [vmem:[%s1103_s0 + $0x78] sm:$0xff]  ;;  %v1058_v18 = vld [vmem:[%s1104_s4] ss:$0 sm:$0xff] }
  0x17   :  { %806 = vmatprep.subr.bf16.mxu0 %v805_v37 }
  0x19   :  { %776 = vmatpush3.bf16.msra.mxu1 %v773_v36 }
  0x1a   :  { %808 = vmatpush3.bf16.msra.mxu0 %v805_v37  ;;  %778 = vmatprep.subr.bf16.mxu1 %v777_v42 }
  0x1b   :  { %810 = vmatprep.subr.bf16.mxu0 %v809_v43 }
  0x1d   :  { %780 = vmatpush3.bf16.msra.mxu1 %v777_v42 }
  0x1e   :  { %812 = vmatpush3.bf16.msra.mxu0 %v809_v43  ;;  %782 = vmatprep.subr.bf16.mxu1 %v781_v48 }
  0x1f   :  { %814 = vmatprep.subr.bf16.mxu0 %v813_v49 }
  0x21   :  { %784 = vmatpush3.bf16.msra.mxu1 %v781_v48 }
  0x22   :  { %816 = vmatpush3.bf16.msra.mxu0 %v813_v49 }
  0x24   :  { %674 = vmatmul.mubr.f32.vlgmr.msra.gmra.mrb[0].mxu1 %v53_v50 }
  0x25   :  { %730 = vmatmul.mubr.f32.vlgmr.msra.gmra.mrb[0].mxu0 %v21_v51  ;;  %676 = vmatprep.mubr.f32.mxu1 %v54_v52 }
  0x26   :  { %732 = vmatprep.mubr.f32.mxu0 %v22_v53 }
  0x28   :  { %677 = vmatmul.mubr.f32.gmra.mrb[2].mxu1 %v55_v54 }
  0x29   :  { %733 = vmatmul.mubr.f32.gmra.mrb[2].mxu0 %v23_v55  ;;  %679 = vmatprep.mubr.f32.mxu1 %v56_v56 }
  0x2a   :  { %735 = vmatprep.mubr.f32.mxu0 %v24_v57 }
  0x2c   :  { %680 = vmatmul.mubr.f32.gmra.mrb[4].mxu1 %v57_v58 }
  0x2d   :  { %736 = vmatmul.mubr.f32.gmra.mrb[4].mxu0 %v25_v59  ;;  %682 = vmatprep.mubr.f32.mxu1 %v58_v60 }
  0x2e   :  { %738 = vmatprep.mubr.f32.mxu0 %v26_v61 }
  0x30   :  { %683 = vmatmul.mubr.f32.gmra.mrb[6].mxu1 %v59_v62 }
  0x31   :  { %739 = vmatmul.mubr.f32.gmra.mrb[6].mxu0 %v27_v63  ;;  %685 = vmatprep.mubr.f32.mxu1 %v60_v0 }
  0x32   :  { %741 = vmatprep.mubr.f32.mxu0 %v28_v1 }
  0x34   :  { %686 = vmatmul.mubr.f32.gmra.mrb[8].mxu1 %v61_v2 }
  0x35   :  { %742 = vmatmul.mubr.f32.gmra.mrb[8].mxu0 %v29_v3  ;;  %688 = vmatprep.mubr.f32.mxu1 %v62_v4 }
  0x36   :  { %744 = vmatprep.mubr.f32.mxu0 %v30_v5 }
  0x38   :  { %689 = vmatmul.mubr.f32.gmra.mrb[10].mxu1 %v63_v6 }
  0x39   :  { %745 = vmatmul.mubr.f32.gmra.mrb[10].mxu0 %v31_v7  ;;  %691 = vmatprep.mubr.f32.mxu1 %v64_v8 }
  0x3a   :  { %747 = vmatprep.mubr.f32.mxu0 %v32_v9 }
  0x3c   :  { %692 = vmatmul.mubr.f32.gmra.mrb[12].mxu1 %v65_v10 }
  0x3d   :  { %748 = vmatmul.mubr.f32.gmra.mrb[12].mxu0 %v33_v11  ;;  %694 = vmatprep.mubr.f32.mxu1 %v66_v12 }
  0x3e   :  { %750 = vmatprep.mubr.f32.mxu0 %v34_v13 }
  0x40   :  { %695 = vmatmul.mubr.f32.gmra.mrb[14].mxu1 %v67_v14 }
  0x41   :  { %751 = vmatmul.mubr.f32.gmra.mrb[14].mxu0 %v35_v15 }
  0xf7   :  { %v675_v16 = vpop.f32.mrb[0].mxu1 }
  0xf8   :  { %v731_v17 = vpop.f32.mrb[0].mxu0  ;;  %v150_v19 = vpop.f32.mrb[1].mxu1 }
  0xf9   :  { %v301_v20 = vadd.f32 %v731_v17, %v675_v16  ;;  %v295_v21 = vpop.f32.mrb[1].mxu0 }
  0xfa   :  { %v296_v22 = vadd.f32 %v295_v21, %v150_v19 }
  0xfb   :  { %v382_v23 = vadd.f32 %v1058_v18, %v301_v20  ;;  %v678_v24 = vpop.f32.mrb[2].mxu1 }
  0xfc   :  { %v381_v25 = vadd.f32 %v1058_v18, %v296_v22  ;;  %v734_v26 = vpop.f32.mrb[2].mxu0  ;;  %v160_v27 = vpop.f32.mrb[3].mxu1 }
  0xfd   :  { %v398_v28 = vmax.f32 %v382_v23, 0.0  ;;  %v311_v29 = vadd.f32 %v734_v26, %v678_v24  ;;  %v305_v30 = vpop.f32.mrb[3].mxu0 }
  0xfe   :  { %v397_v31 = vmax.f32 %v381_v25, 0.0  ;;  %v306_v32 = vadd.f32 %v305_v30, %v160_v27 }
  0xff   :  { %v384_v33 = vadd.f32 %v1058_v18, %v311_v29  ;;  %v681_v34 = vpop.f32.mrb[4].mxu1 }
 0x100   :  { %v533_v35 = vpack.c.bf16 %v398_v28, %v397_v31  ;;  %v383_v36 = vadd.f32 %v1058_v18, %v306_v32  ;;  %v737_v37 = vpop.f32.mrb[4].mxu0  ;;  %v170_v38 = vpop.f32.mrb[5].mxu1 }
 0x101   :  { %v400_v39 = vmax.f32 %v384_v33, 0.0  ;;  %v321_v40 = vadd.f32 %v737_v37, %v681_v34  ;;  %v315_v41 = vpop.f32.mrb[5].mxu0 }
 0x102   :  { %534 = vst [vmem:[%s1105_s5] sm:$0xff] %v533_v35   ;;  %v399_v42 = vmax.f32 %v383_v36, 0.0  ;;  %v316_v43 = vadd.f32 %v315_v41, %v170_v38 }
 0x103   :  { %v386_v44 = vadd.f32 %v1058_v18, %v321_v40  ;;  %v684_v45 = vpop.f32.mrb[6].mxu1 }
 0x104   :  { %v538_v46 = vpack.c.bf16 %v400_v39, %v399_v42  ;;  %v385_v47 = vadd.f32 %v1058_v18, %v316_v43  ;;  %v740_v48 = vpop.f32.mrb[6].mxu0  ;;  %v180_v49 = vpop.f32.mrb[7].mxu1 }
 0x105   :  { %v402_v50 = vmax.f32 %v386_v44, 0.0  ;;  %v331_v51 = vadd.f32 %v740_v48, %v684_v45  ;;  %v325_v52 = vpop.f32.mrb[7].mxu0 }
 0x106   :  { %570 = vst [vmem:[%s1105_s5 + $0x8] sm:$0xff] %v538_v46   ;;  %v401_v53 = vmax.f32 %v385_v47, 0.0  ;;  %v326_v54 = vadd.f32 %v325_v52, %v180_v49 }
 0x107   :  { %v388_v55 = vadd.f32 %v1058_v18, %v331_v51  ;;  %v687_v56 = vpop.f32.mrb[8].mxu1 }
 0x108   :  { %v543_v57 = vpack.c.bf16 %v402_v50, %v401_v53  ;;  %v387_v58 = vadd.f32 %v1058_v18, %v326_v54  ;;  %v743_v59 = vpop.f32.mrb[8].mxu0  ;;  %v190_v60 = vpop.f32.mrb[9].mxu1 }
 0x109   :  { %v404_v61 = vmax.f32 %v388_v55, 0.0  ;;  %v341_v62 = vadd.f32 %v743_v59, %v687_v56  ;;  %v335_v63 = vpop.f32.mrb[9].mxu0 }
 0x10a   :  { %571 = vst [vmem:[%s1105_s5 + $0x10] sm:$0xff] %v543_v57   ;;  %v403_v0 = vmax.f32 %v387_v58, 0.0  ;;  %v336_v1 = vadd.f32 %v335_v63, %v190_v60 }
 0x10b   :  { %v390_v2 = vadd.f32 %v1058_v18, %v341_v62  ;;  %v690_v3 = vpop.f32.mrb[10].mxu1 }
 0x10c   :  { %v548_v4 = vpack.c.bf16 %v404_v61, %v403_v0  ;;  %v389_v5 = vadd.f32 %v1058_v18, %v336_v1  ;;  %v746_v6 = vpop.f32.mrb[10].mxu0  ;;  %v200_v7 = vpop.f32.mrb[11].mxu1 }
 0x10d   :  { %v406_v8 = vmax.f32 %v390_v2, 0.0  ;;  %v351_v9 = vadd.f32 %v746_v6, %v690_v3  ;;  %v345_v10 = vpop.f32.mrb[11].mxu0 }
 0x10e   :  { %572 = vst [vmem:[%s1105_s5 + $0x18] sm:$0xff] %v548_v4   ;;  %v405_v11 = vmax.f32 %v389_v5, 0.0  ;;  %v346_v12 = vadd.f32 %v345_v10, %v200_v7 }
 0x10f   :  { %v392_v13 = vadd.f32 %v1058_v18, %v351_v9  ;;  %v693_v14 = vpop.f32.mrb[12].mxu1 }
 0x110   :  { %v553_v15 = vpack.c.bf16 %v406_v8, %v405_v11  ;;  %v391_v16 = vadd.f32 %v1058_v18, %v346_v12  ;;  %v749_v17 = vpop.f32.mrb[12].mxu0  ;;  %v210_v19 = vpop.f32.mrb[13].mxu1 }
 0x111   :  { %v408_v20 = vmax.f32 %v392_v13, 0.0  ;;  %v361_v21 = vadd.f32 %v749_v17, %v693_v14  ;;  %v355_v22 = vpop.f32.mrb[13].mxu0 }
 0x112   :  { %573 = vst [vmem:[%s1105_s5 + $0x20] sm:$0xff] %v553_v15   ;;  %v407_v23 = vmax.f32 %v391_v16, 0.0  ;;  %v356_v24 = vadd.f32 %v355_v22, %v210_v19 }
 0x113   :  { %v394_v25 = vadd.f32 %v1058_v18, %v361_v21  ;;  %v696_v26 = vpop.f32.mrb[14].mxu1 }
 0x114   :  { %v558_v27 = vpack.c.bf16 %v408_v20, %v407_v23  ;;  %v393_v28 = vadd.f32 %v1058_v18, %v356_v24  ;;  %v752_v29 = vpop.f32.mrb[14].mxu0  ;;  %v220_v30 = vpop.f32.mrb[15].mxu1 }
 0x115   :  { %v410_v31 = vmax.f32 %v394_v25, 0.0  ;;  %v371_v32 = vadd.f32 %v752_v29, %v696_v26  ;;  %v365_v33 = vpop.f32.mrb[15].mxu0 }
 0x116   :  { %574 = vst [vmem:[%s1105_s5 + $0x28] sm:$0xff] %v558_v27   ;;  %v409_v34 = vmax.f32 %v393_v28, 0.0  ;;  %v366_v35 = vadd.f32 %v365_v33, %v220_v30 }
 0x117   :  { %v396_v36 = vadd.f32 %v1058_v18, %v371_v32 }
 0x118   :  { %v563_v37 = vpack.c.bf16 %v410_v31, %v409_v34  ;;  %v395_v38 = vadd.f32 %v1058_v18, %v366_v35 }
 0x119   :  { %v412_v39 = vmax.f32 %v396_v36, 0.0 }
 0x11a   :  { %575 = vst [vmem:[%s1105_s5 + $0x30] sm:$0xff] %v563_v37   ;;  %v411_v40 = vmax.f32 %v395_v38, 0.0 }
 0x11c   :  { %v568_v41 = vpack.c.bf16 %v412_v39, %v411_v40 }
 0x11e   :  { %576 = vst [vmem:[%s1105_s5 + $0x38] sm:$0xff] %v568_v41  }

</bundles_post_ra>
